<compile_context>
chip_gen: v5e
topology: v5e:2x2
jax: 0.10.0
libtpu: 0.0.40
codegen_flags: <defaults>
</compile_context>

<pallas_src>
import jax
import jax.numpy as jnp
from jax.experimental import pallas as pl
from jax.experimental.pallas import tpu as pltpu


# --------------------------------------------------------------------------
# Kernels: fused affine  out = scale * x + bias  (f32 math, in/out dtype kept)
# --------------------------------------------------------------------------

def _affine_rows_kernel(x_ref, p_ref, out_ref):
    # x_ref: (TR, TN); p_ref: (TR, 2) f32 with [:,0]=scale, [:,1]=bias
    # (per-row params, broadcast along lanes).
    x = x_ref[...].astype(jnp.float32)
    scale = p_ref[:, 0:1]
    bias = p_ref[:, 1:2]
    out_ref[...] = (x * scale + bias).astype(out_ref.dtype)


def _affine_lanes_kernel(x_ref, p_ref, out_ref):
    # x_ref: (TB, TC); p_ref: (2, TC) f32 with [0]=scale, [1]=bias
    # (per-lane params, broadcast along sublanes).
    x = x_ref[...].astype(jnp.float32)
    scale = p_ref[0:1, :]
    bias = p_ref[1:2, :]
    out_ref[...] = (x * scale + bias).astype(out_ref.dtype)


# --------------------------------------------------------------------------
# Tiling helpers
# --------------------------------------------------------------------------

_SUBLANE_UNIT = {4: 8, 2: 16, 1: 32}
_TARGET_TILE_BYTES = 4 << 20  # ~4 MiB per tile (85%+ of measured HBM roofline)


def _choose_tiles(rows, cols, itemsize):
    """Dtype-aware, byte-budgeted (rows, lanes) tile selection."""
    sub = _SUBLANE_UNIT.get(itemsize, 8)
    lane = 128
    # Row tile: sublane-dense, capped at 512 rows.
    if rows <= sub:
        tr = rows                       # full extent is always legal
    else:
        tr = min(rows, 512)
        tr -= tr % sub
    # Lane tile: lane-dense, fill the tile up to the byte budget.
    if cols <= lane:
        tc = cols                       # full extent (tiny tensors only)
    else:
        cap = max(lane, _TARGET_TILE_BYTES // (tr * itemsize))
        tc = min(cols, cap)
        tc -= tc % lane
    # v7x megacore: if everything fits in a single tile but there are enough
    # rows to split, give the (parallel) row axis >= 2 grid steps.
    if rows > sub and tr >= rows and tc >= cols:
        half = ((rows + 1) // 2 + sub - 1) // sub * sub
        if half < rows:
            tr = half
    return tr, tc


def _vmem_limit_bytes(tile_bytes, param_bytes):
    # double-buffered (input tile + output tile + param block) + 2x headroom,
    # floored at 32 MiB, capped well under v7x's 64 MiB physical VMEM.
    need = 2 * (2 * tile_bytes + param_bytes)
    return int(min(max(2 * need, 32 << 20), 48 << 20))


def _run_affine(x2, params, kernel, row_params, donate_input):
    """Launch the streaming affine over a (rows, lanes) view."""
    rows, cols = x2.shape
    itemsize = jnp.dtype(x2.dtype).itemsize
    tr, tc = _choose_tiles(rows, cols, itemsize)
    grid = (pl.cdiv(rows, tr), pl.cdiv(cols, tc))

    tile_bytes = tr * tc * itemsize
    # Param block VMEM footprint (lanes padded to 128 / sublanes to 8).
    param_bytes = (max(tr, 8) * 128 * 4) if row_params else (8 * max(tc, 128) * 4)

    if row_params:
        in_specs = [
            pl.BlockSpec((tr, tc), lambda i, j: (i, j)),
            pl.BlockSpec((tr, 2), lambda i, j: (i, 0)),   # constant over inner j
        ]
    else:
        in_specs = [
            pl.BlockSpec((tr, tc), lambda i, j: (i, j)),
            pl.BlockSpec((2, tc), lambda i, j: (0, j)),
        ]

    cost = pl.CostEstimate(
        flops=2 * rows * cols,
        transcendentals=0,
        bytes_accessed=2 * rows * cols * itemsize + params.size * 4,
    )

    kwargs = {}
    if donate_input:
        kwargs["input_output_aliases"] = {0: 0}

    return pl.pallas_call(
        kernel,
        out_shape=jax.ShapeDtypeStruct((rows, cols), x2.dtype),
        grid=grid,
        in_specs=in_specs,
        out_specs=pl.BlockSpec((tr, tc), lambda i, j: (i, j)),
        compiler_params=pltpu.CompilerParams(
            dimension_semantics=("parallel", "parallel"),
            vmem_limit_bytes=_vmem_limit_bytes(tile_bytes, param_bytes),
        ),
        cost_estimate=cost,
        **kwargs,
    )(x2, params)


# --------------------------------------------------------------------------
# Public forward
# --------------------------------------------------------------------------

def vector_act_norm_forward(x, loc, scale, logdet=True, reverse=False,
                            donate_input=False):
    """Forward pass of VectorActNorm.

    x: (B, C, H, W) or (B, C) float.  loc, scale: broadcastable to (1, C, 1, 1).
    reverse=False: returns (out.squeeze(), logdet) if logdet else out.squeeze().
    reverse=True : returns out.squeeze() (matches torch .reverse()).
    """
    if x.ndim == 2:
        x = x[:, :, None, None]
    assert x.ndim == 4, "only 2D (B,C) and 4D (B,C,H,W) inputs are supported"
    B, C, H, W = x.shape
    N = H * W
    itemsize = jnp.dtype(x.dtype).itemsize

    scale_c = scale.reshape(C).astype(jnp.float32)
    loc_c = loc.reshape(C).astype(jnp.float32)
    if not reverse:
        scale_eff = scale_c
        bias_eff = scale_c * loc_c            # scale * (x + loc) = scale*x + scale*loc
    else:
        scale_eff = 1.0 / scale_c
        bias_eff = -loc_c                     # x / scale - loc

    if N >= 128:
        # Row layout: rows = B*C (per-row params), lanes = H*W.
        R = B * C
        x2 = x.reshape(R, N)
        params = jnp.stack(
            [jnp.broadcast_to(scale_eff[None, :], (B, C)).reshape(R),
             jnp.broadcast_to(bias_eff[None, :], (B, C)).reshape(R)],
            axis=1)                                              # (R, 2) f32
        Np = -(-N // 128) * 128
        if Np != N:
            x2 = jnp.pad(x2, ((0, 0), (0, Np - N)))              # lane-dense stores
        out2 = _run_affine(x2, params, _affine_rows_kernel,
                           row_params=True, donate_input=donate_input)
        if Np != N:
            out2 = out2[:, :N]
        out = out2.reshape(B, C, H, W)
    else:
        # Lane layout: rows = B, lanes = C*H*W (per-lane params).
        L = C * N
        x2 = x.reshape(B, L)
        params = jnp.stack(
            [jnp.repeat(scale_eff, N), jnp.repeat(bias_eff, N)], axis=0)  # (2, L) f32
        Lp = L
        if L > 128 and L % 128 != 0:
            Lp = -(-L // 128) * 128
            x2 = jnp.pad(x2, ((0, 0), (0, Lp - L)))
            params = jnp.pad(params, ((0, 0), (0, Lp - L)), constant_values=1.0)
        out2 = _run_affine(x2, params, _affine_lanes_kernel,
                           row_params=False, donate_input=donate_input)
        if Lp != L:
            out2 = out2[:, :L]
        out = out2.reshape(B, C, H, W)

    out = jnp.squeeze(out)  # torch .squeeze(): removes ALL size-1 dims

    if reverse or not logdet:
        return out

    # logdet = H * W * sum(log|scale|) * ones(B)  — O(C), plain JAX.
    ld = jnp.float32(H * W) * jnp.sum(jnp.log(jnp.abs(scale_c)))
    logdet_vec = (ld * jnp.ones((B,), jnp.float32)).astype(x.dtype)
    return out, logdet_vec


def actnorm_data_init(x):
    """Functional equivalent of VectorActNorm.initialize (first-call data init).

    loc = -mean(channel), scale = 1/(std(channel, unbiased) + 1e-6).
    """
    # TODO(synk): the torch module mutates its `initialized` buffer in-place;
    # state management stays with the caller in this functional version.
    if x.ndim == 2:
        x = x[:, :, None, None]
    B, C, H, W = x.shape
    flat = jnp.transpose(x, (1, 0, 2, 3)).reshape(C, -1)
    mean = flat.mean(axis=1)
    std = flat.std(axis=1, ddof=1)  # torch.std default is unbiased
    loc = (-mean).reshape(1, C, 1, 1)
    scale = (1.0 / (std + 1e-6)).reshape(1, C, 1, 1)
    return loc, scale


if __name__ == "__main__":
    key = jax.random.PRNGKey(0)
    kx, kl, ks, k2 = jax.random.split(key, 4)

    # --- 4D NCHW path (row layout, lane-dense spatial) ---
    B, C, H, W = 2, 4, 16, 16
    x = jax.random.normal(kx, (B, C, H, W), dtype=jnp.float32)
    loc = 0.1 * jax.random.normal(kl, (1, C, 1, 1), dtype=jnp.float32)
    scale = 1.0 + 0.5 * jax.random.uniform(ks, (1, C, 1, 1), dtype=jnp.float32)

    out, logdet = vector_act_norm_forward(x, loc, scale, logdet=True)
    out = jax.block_until_ready(out)
    logdet = jax.block_until_ready(logdet)
    ref_out = jnp.squeeze(scale * (x + loc))
    ref_ld = (H * W * jnp.sum(jnp.log(jnp.abs(scale)))) * jnp.ones((B,), x.dtype)
    assert out.shape == ref_out.shape and logdet.shape == (B,)
    assert jnp.allclose(out, ref_out, atol=1e-5, rtol=1e-5)
    assert jnp.allclose(logdet, ref_ld, atol=1e-5, rtol=1e-5)

    # --- reverse path ---
    rev = vector_act_norm_forward(out.reshape(B, C, H, W), loc, scale, reverse=True)
    rev = jax.block_until_ready(rev)
    assert jnp.allclose(rev, jnp.squeeze(x), atol=1e-5, rtol=1e-5)

    # --- data-dependent first-call init (functional helper) ---
    loc_i, scale_i = actnorm_data_init(x)
    out_i, _ = vector_act_norm_forward(x, loc_i, scale_i, logdet=True)
    out_i = jax.block_until_ready(out_i)
    assert jnp.allclose(out_i, jnp.squeeze(scale_i * (x + loc_i)), atol=1e-5, rtol=1e-5)

    # --- bf16 activations (f32 math inside the kernel, bf16 in HBM) ---
    xb = x.astype(jnp.bfloat16)
    out_b, _ = vector_act_norm_forward(xb, loc, scale, logdet=True)
    out_b = jax.block_until_ready(out_b)
    ref_b = jnp.squeeze((scale * (xb.astype(jnp.float32) + loc))).astype(jnp.bfloat16)
    assert jnp.allclose(out_b.astype(jnp.float32), ref_b.astype(jnp.float32),
                        atol=2e-2, rtol=2e-2)

    # --- 2D (B, channels) input path (lane layout, channel on lanes) ---
    Bc, Cc = 4, 256
    x2d = jax.random.normal(k2, (Bc, Cc), dtype=jnp.float32)
    loc2 = 0.1 * jax.random.normal(kl, (1, Cc, 1, 1), dtype=jnp.float32)
    scale2 = 1.0 + 0.5 * jax.random.uniform(ks, (1, Cc, 1, 1), dtype=jnp.float32)
    out2, ld2 = vector_act_norm_forward(x2d, loc2, scale2, logdet=True)
    out2 = jax.block_until_ready(out2)
    ref2 = jnp.squeeze(scale2 * (x2d[:, :, None, None] + loc2))
    ref_ld2 = jnp.sum(jnp.log(jnp.abs(scale2))) * jnp.ones((Bc,), x2d.dtype)
    assert jnp.allclose(out2, ref2, atol=1e-5, rtol=1e-5)
    assert jnp.allclose(ld2, ref_ld2, atol=1e-5, rtol=1e-5)

    # --- small-spatial 4D path (H*W < 128 -> lane layout, padded lanes) ---
    x7 = jax.random.normal(kx, (2, 4, 7, 7), dtype=jnp.float32)
    out7, _ = vector_act_norm_forward(x7, loc, scale, logdet=True)
    out7 = jax.block_until_ready(out7)
    ref7 = jnp.squeeze(scale * (x7 + loc))
    assert jnp.allclose(out7, ref7, atol=1e-5, rtol=1e-5)

    print("KERNEL_OK")
</pallas_src>

<mosaic_0001>
module attributes {stable_mosaic.version = 11 : i64} {
  func.func @_affine_rows_kernel(%arg0: i32, %arg1: i32, %arg2: memref<8x256xf32, #tpu.memory_space<vmem>>, %arg3: memref<8x2xf32, #tpu.memory_space<vmem>>, %arg4: memref<8x256xf32, #tpu.memory_space<vmem>>) attributes {dimension_semantics = [#tpu.dimension_semantics<parallel>, #tpu.dimension_semantics<parallel>], iteration_bounds = array<i64: 1, 1>, scalar_prefetch = 0 : i64, scratch_operands = 0 : i64, tpu.core_type = #tpu.core_type<tc>, window_params = [{transform_indices = @transform_0, window_bounds = array<i64: 8, 256>}, {transform_indices = @transform_1, window_bounds = array<i64: 8, 2>}, {transform_indices = @transform_2, window_bounds = array<i64: 8, 256>}]} {
    %c0 = arith.constant 0 : index
    %c0_0 = arith.constant 0 : index
    %0 = vector.load %arg2[%c0, %c0_0] : memref<8x256xf32, #tpu.memory_space<vmem>>, vector<8x256xf32>
    %c0_1 = arith.constant 0 : index
    %c0_2 = arith.constant 0 : index
    %1 = vector.load %arg3[%c0_1, %c0_2] : memref<8x2xf32, #tpu.memory_space<vmem>>, vector<8x1xf32>
    %c0_3 = arith.constant 0 : index
    %c1 = arith.constant 1 : index
    %2 = vector.load %arg3[%c0_3, %c1] : memref<8x2xf32, #tpu.memory_space<vmem>>, vector<8x1xf32>
    %3 = vector.broadcast %1 : vector<8x1xf32> to vector<8x256xf32>
    %4 = arith.mulf %0, %3 : vector<8x256xf32>
    %5 = vector.broadcast %2 : vector<8x1xf32> to vector<8x256xf32>
    %6 = arith.addf %4, %5 : vector<8x256xf32>
    %c0_4 = arith.constant 0 : index
    %c0_5 = arith.constant 0 : index
    %7 = vector.load %arg4[%c0_4, %c0_5] : memref<8x256xf32, #tpu.memory_space<vmem>>, vector<8x256xf32>
    tpu.vector_store %arg4[%c0_4, %c0_5], %6 {strides = array<i32>} : memref<8x256xf32, #tpu.memory_space<vmem>>, vector<8x256xf32>,
    return
  }
  func.func @transform_0(%arg0: i32, %arg1: i32) -> (i32, i32) {
    %c0_i32 = arith.constant 0 : i32
    return %arg0, %arg1 : i32, i32
  }
  func.func @transform_1(%arg0: i32, %arg1: i32) -> (i32, i32) {
    %c0_i32 = arith.constant 0 : i32
    %c0_i32_0 = arith.constant 0 : i32
    return %arg0, %c0_i32 : i32, i32
  }
  func.func @transform_2(%arg0: i32, %arg1: i32) -> (i32, i32) {
    %c0_i32 = arith.constant 0 : i32
    return %arg0, %arg1 : i32, i32
  }
}

</mosaic_0001>

<bundles_post_ra>
// kernel: tpu_custom_call.1
= control target key start
LH: loop header
LB: loop body
LE: loop exit
PB: predicated region body
PF: predicated region fallthrough
CT: control target
= control target key end

     0   :  { %7 = vsyncpa [#allocation3], 0  ;;  %s147_s0 = inlined_call_operand.hbm [shape: f32[8,256], index: 0, kind: input, shape index: {}]   ;;  %s148_s1 = inlined_call_operand.vmem [shape: f32[8,2], index: 1, kind: input, shape index: {}]   ;;  %s149_s2 = inlined_call_operand.hbm [shape: f32[8,256], index: 2, kind: output, shape index: {}]  }
   0x1   :  { %8 = vsyncpa [#allocation4], 0  ;;  %s14_s11 = sshll.u32 %s147_s0, 4  ;;  %s119_s12 = smov [#allocation2]   ;;  %s15_s11 = int_to_ptr.hbm [resolvable:$true] %s14_s11 }
   0x2   :  { %s16_s13 = sshll.u32 %s119_s12, 4  ;;  %s17_s13 = int_to_ptr.vmem [resolvable:$true] %s16_s13 }
   0x3   :  { %19 = dma.hbm_to_vmem [thread:$0]  %s15_s11, 256, %s17_s13, [#allocation3]  }
   0x4   :  { %115 = dma.done.wait [#allocation3], 256  }
   0x5   :  { %116 = vsyncadd [#allocation3], 4294967040  ;;  %v120_v0 = vmov 0   ;;  %v28_v1 = vld [vmem:[%s148_s1] sm:$0xff]  ;;  %v121_v2 = vmov 1   ;;  %v27_v5 = vld [vmem:[#allocation2 + $0x8] sm:$0xff] }
   0x6   :  { %65 = vset.pattern.permute.xlu0 %v120_v0  ;;  %v26_v4 = vld [vmem:[#allocation2] sm:$0xff]  ;;  %s122_s0 = smov [#allocation5]   ;;  %s51_s19 = sshll.u32 %s149_s2, 4  ;;  %s52_s19 = int_to_ptr.hbm [resolvable:$true] %s51_s19 }
   0x7   :  { %31 = vperm.xlu0 %65, %v28_v1   ;;  %s49_s16 = sshll.u32 %s122_s0, 4  ;;  %s50_s16 = int_to_ptr.vmem [resolvable:$true] %s49_s16 }
   0xf   :  { %66 = vset.pattern.permute.xlu0 %v121_v2 }
  0x10   :  { %37 = vperm.xlu0 %66, %v28_v1  }
  0x79   :  { %v32_v3 = vpop.permute.xlu0 %31 }
  0x7a   :  { %v34_v6 = vmul.f32 %v32_v3, %v26_v4  ;;  %v35_v7 = vmul.f32 %v32_v3, %v27_v5 }
  0x82   :  { %v38_v8 = vpop.permute.xlu0 %37 }
  0x83   :  { %v40_v9 = vadd.f32 %v38_v8, %v34_v6  ;;  %v41_v10 = vadd.f32 %v38_v8, %v35_v7 }
  0x85   :  { %42 = vst [vmem:[#allocation5] sm:$0xff] %v40_v9 }
  0x86   :  { %43 = vst [vmem:[#allocation5 + $0x8] sm:$0xff] %v41_v10 }
  0x87   :  { %54 = dma.vmem_to_hbm [thread:$0]  %s50_s16, 256, %s52_s19, [#allocation4]  }
  0x88   :  { %117 = dma.done.wait [#allocation4], 256  }
  0x89   :  { %118 = vsyncadd [#allocation4], 4294967040 }
  0x8a   :  { %59 = vsyncpa [#allocation3], 1 }
  0x8b   :  { %60 = vsyncpa [#allocation4], 1 }

</bundles_post_ra>
